<compile_context>
chip_gen: v6e
topology: v6e:2x2x1
jax: 0.10.0
libtpu: 0.0.40
codegen_flags: <defaults>
</compile_context>

<pallas_src>
import jax
import jax.numpy as jnp
from jax.experimental import pallas as pl
from jax.experimental.pallas import tpu as pltpu

LANE = 128  # lane width / alignment target for the hidden dim


def _round_up(n: int, m: int) -> int:
    return ((n + m - 1) // m) * m


def dualnet_kernel(x_ref, w1_ref, b1_ref, w2_ref, b2_ref, out_ref):
    # fc1 on the MXU, f32 in / f32 accumulate.
    h = jnp.dot(x_ref[...], w1_ref[...], preferred_element_type=jnp.float32)
    # bias + tanh on VPU/EUP (f32 -- v5e has no bf16 VPU/EUP datapath).
    h = jnp.tanh(h + b1_ref[...])                              # (B, Hp) f32
    # fc2 has out_dim == 1: VPU multiply + lane (XLU) reduce keeps the MXU
    # out of the dependent second step entirely.
    y = jnp.sum(h * w2_ref[...], axis=-1, keepdims=True)       # (B, 1) f32
    # scalar fc2 bias lives in SMEM.
    out_ref[...] = (y + b2_ref[0]).astype(out_ref.dtype)


def make_dualnet_forward(w1, b1, w2, b2):
    """Build the forward closure. Weight prep happens exactly once, here.

    w1: (D_in, H) f32   (already transposed from PyTorch's (H, D_in))
    b1: (H,)      f32
    w2: (H, 1)    f32   (already transposed from PyTorch's (1, H))
    b2: (1,)      f32

    Returns forward(x) computing tanh(x @ w1 + b1) @ w2 + b2 for x: (B, D_in).
    """
    D_in, H = w1.shape
    out_dim = w2.shape[1]
    assert out_dim == 1, "DualNet fc2 has a single output unit"

    Hp = _round_up(H, LANE)

    # Static, one-time padding of the hidden dim to a full lane width.
    # Zero padding is exact: tanh(0 + 0) * 0 == 0 in the fc2 reduce.
    w1_p = jnp.pad(w1.astype(jnp.float32), ((0, 0), (0, Hp - H)))      # (D_in, Hp)
    b1_row = jnp.pad(b1.astype(jnp.float32), (0, Hp - H)).reshape(1, Hp)
    w2_row = jnp.pad(w2[:, 0].astype(jnp.float32), (0, Hp - H)).reshape(1, Hp)
    b2_s = b2.reshape(1).astype(jnp.float32)                            # SMEM scalar

    def _forward(x):
        B = x.shape[0]
        cost = pl.CostEstimate(
            flops=2 * B * D_in * Hp + 2 * B * Hp,
            transcendentals=B * Hp,
            bytes_accessed=(x.size * 4 + w1_p.size * 4 + b1_row.size * 4
                            + w2_row.size * 4 + 4 + B * out_dim * 4),
        )
        return pl.pallas_call(
            dualnet_kernel,
            out_shape=jax.ShapeDtypeStruct((B, out_dim), jnp.float32),
            in_specs=[
                pl.BlockSpec(memory_space=pltpu.MemorySpace.VMEM),  # x  (B, D_in)
                pl.BlockSpec(memory_space=pltpu.MemorySpace.VMEM),  # w1 (D_in, Hp)
                pl.BlockSpec(memory_space=pltpu.MemorySpace.VMEM),  # b1 (1, Hp)
                pl.BlockSpec(memory_space=pltpu.MemorySpace.VMEM),  # w2 (1, Hp)
                pl.BlockSpec(memory_space=pltpu.MemorySpace.SMEM),  # b2 (1,)
            ],
            out_specs=pl.BlockSpec(memory_space=pltpu.MemorySpace.VMEM),
            cost_estimate=cost,
        )(x.astype(jnp.float32), w1_p, b1_row, w2_row, b2_s)

    # jit so the padded weights are bound once and the per-call path is just
    # the compiled pallas_call on x.
    return jax.jit(_forward)


if __name__ == "__main__":
    key = jax.random.PRNGKey(0)
    k_x, k_w1, k_w2 = jax.random.split(key, 3)

    input_dim = 100   # fc1_dim
    hidden = 100      # fc2_dim
    out_dim = 1       # fc3_dim
    batch = 8

    # Deterministic init matching the module: weights ~ N(0, 0.1), biases = 0.
    x = jax.random.normal(k_x, (batch, input_dim), dtype=jnp.float32)
    # PyTorch stores Linear weight as (out, in); generate that then transpose.
    w1_pt = 0.1 * jax.random.normal(k_w1, (hidden, input_dim), dtype=jnp.float32)
    w2_pt = 0.1 * jax.random.normal(k_w2, (out_dim, hidden), dtype=jnp.float32)
    w1 = w1_pt.T            # (input_dim, hidden)
    w2 = w2_pt.T            # (hidden, out_dim)
    b1 = jnp.zeros((hidden,), dtype=jnp.float32)
    b2 = jnp.zeros((out_dim,), dtype=jnp.float32)

    forward = make_dualnet_forward(w1, b1, w2, b2)
    out = forward(x)
    jax.block_until_ready(out)

    # Pure-JAX f32 reference of the forward semantics (kernel is f32
    # end-to-end now -> tight tolerance).
    ref = jnp.tanh(x @ w1 + b1) @ w2 + b2
    assert out.shape == (batch, out_dim)
    assert jnp.allclose(out, ref, atol=1e-5, rtol=1e-5), (
        f"max abs err {jnp.max(jnp.abs(out - ref))}")

    print("KERNEL_OK")
</pallas_src>

<mosaic_0001>
module attributes {stable_mosaic.version = 11 : i64} {
  func.func @dualnet_kernel(%arg0: memref<8x100xf32, #tpu.memory_space<vmem>>, %arg1: memref<100x128xf32, #tpu.memory_space<vmem>>, %arg2: memref<1x128xf32, #tpu.memory_space<vmem>>, %arg3: memref<1x128xf32, #tpu.memory_space<vmem>>, %arg4: memref<1xf32, #tpu.memory_space<smem>>, %arg5: memref<8x1xf32, #tpu.memory_space<vmem>>) attributes {dimension_semantics = [], scalar_prefetch = 0 : i64, scratch_operands = 0 : i64, tpu.core_type = #tpu.core_type<tc>} {
    %c0 = arith.constant 0 : index
    %c0_0 = arith.constant 0 : index
    %0 = vector.load %arg0[%c0, %c0_0] : memref<8x100xf32, #tpu.memory_space<vmem>>, vector<8x100xf32>
    %c0_1 = arith.constant 0 : index
    %c0_2 = arith.constant 0 : index
    %1 = vector.load %arg1[%c0_1, %c0_2] : memref<100x128xf32, #tpu.memory_space<vmem>>, vector<100x128xf32>
    %cst = arith.constant dense<0.000000e+00> : vector<8x128xf32>
    %2 = tpu.matmul %0, %1, %cst {dimension_numbers = #tpu.dot_dimension_numbers<[1], [0], [0], [1], [0, 0, 1, 1], [], []>} : vector<8x100xf32>, vector<100x128xf32>, vector<8x128xf32> -> vector<8x128xf32>
    %c0_3 = arith.constant 0 : index
    %c0_4 = arith.constant 0 : index
    %3 = vector.load %arg2[%c0_3, %c0_4] : memref<1x128xf32, #tpu.memory_space<vmem>>, vector<1x128xf32>
    %4 = vector.broadcast %3 : vector<1x128xf32> to vector<8x128xf32>
    %5 = arith.addf %2, %4 : vector<8x128xf32>
    %6 = math.tanh %5 : vector<8x128xf32>
    %c0_5 = arith.constant 0 : index
    %c0_6 = arith.constant 0 : index
    %7 = vector.load %arg3[%c0_5, %c0_6] : memref<1x128xf32, #tpu.memory_space<vmem>>, vector<1x128xf32>
    %8 = vector.broadcast %7 : vector<1x128xf32> to vector<8x128xf32>
    %9 = arith.mulf %6, %8 : vector<8x128xf32>
    %cst_7 = arith.constant dense<0.000000e+00> : vector<8xf32>
    %10 = vector.multi_reduction <add>, %9, %cst_7 [1] : vector<8x128xf32> to vector<8xf32>
    %11 = vector.shape_cast %10 : vector<8xf32> to vector<8x1xf32>
    %c0_8 = arith.constant 0 : index
    %12 = memref.load %arg4[%c0_8] : memref<1xf32, #tpu.memory_space<smem>>
    %13 = vector.broadcast %12 : f32 to vector<8x1xf32>
    %14 = arith.addf %11, %13 : vector<8x1xf32>
    %c0_9 = arith.constant 0 : index
    %c0_10 = arith.constant 0 : index
    %15 = vector.load %arg5[%c0_9, %c0_10] : memref<8x1xf32, #tpu.memory_space<vmem>>, vector<8x1xf32>
    tpu.vector_store %arg5[%c0_9, %c0_10], %14 {strides = array<i32>} : memref<8x1xf32, #tpu.memory_space<vmem>>, vector<8x1xf32>,
    return
  }
}

</mosaic_0001>

<bundles_post_ra>
// kernel: _forward.1
= control target key start
LH: loop header
LB: loop body
LE: loop exit
PB: predicated region body
PF: predicated region fallthrough
CT: control target
= control target key end

     0   :  { %11 = vsyncpa [#allocation4], 0  ;;  %s321_s0 = inlined_call_operand.hbm [shape: f32[8,100], index: 0, kind: input, shape index: {}]   ;;  %s322_s1 = inlined_call_operand.hbm [shape: f32[100,128], index: 1, kind: input, shape index: {}]   ;;  %s323_s2 = inlined_call_operand.vmem [shape: f32[1,128], index: 2, kind: input, shape index: {}]   ;;  %s324_s3 = inlined_call_operand.vmem [shape: f32[1,128], index: 3, kind: input, shape index: {}]   ;;  %s325_s4 = inlined_call_operand.<no memory space> [shape: f32[1], index: 4, kind: input, shape index: {}]   ;;  %s326_s5 = inlined_call_operand.vmem [shape: f32[8,1], index: 5, kind: output, shape index: {}]  }
   0x1   :  { %12 = vsyncpa [#allocation6], 0  ;;  %s267_s18 = smov [#allocation3]   ;;  %s268_s20 = smov [#allocation5]  }
   0x2   :  { %s19_s19 = sshll.u32 %s267_s18, 4  ;;  %s28_s21 = sshll.u32 %s268_s20, 4  ;;  %s20_s19 = int_to_ptr.vmem [resolvable:$true] %s19_s19  ;;  %s29_s21 = int_to_ptr.vmem [resolvable:$true] %s28_s21 }
   0x3   :  { %s231_s22 = scalar_lea.vmem %s20_s19, 128  ;;  %p236_p1 = scmp.lt.s32.totalorder %s20_s19, %s20_s19 }
   0x4   :  { %p232_p0 = scmp.ne.s32.totalorder %s20_s19, %s231_s22  ;;  %p237_p2 = scmp.lt.s32.totalorder %s231_s22, %s231_s22 }
   0x6   :  { %p238_p3 = por %p237_p2, %p236_p1 }
   0x8   :  { %p239_p4 = pnand %p238_p3, %p232_p0 }
   0xa   :  { %242 = shalt.err (!%p239_p4)
}
   0xb   :  { %22 = dma.hbm_to_vmem [thread:$0]  %s321_s0, 128, %s20_s19, [#allocation4]  }
   0xc   :  { %s251_s25 = scalar_lea.vmem %s29_s21, 1664  ;;  %p256_p6 = scmp.lt.s32.totalorder %s29_s21, %s29_s21 }
   0xd   :  { %p252_p5 = scmp.ne.s32.totalorder %s29_s21, %s251_s25  ;;  %p257_p7 = scmp.lt.s32.totalorder %s251_s25, %s251_s25 }
   0xf   :  { %p258_p8 = por %p257_p7, %p256_p6 }
  0x11   :  { %p259_p9 = pnand %p258_p8, %p252_p5 }
  0x13   :  { %262 = shalt.err (!%p259_p9)
}
  0x14   :  { %s269_s26 = smov 128   ;;  %s270_s27 = smov 8  }
  0x15   :  { %34 = dma.hbm_to_vmem [thread:$0]  %s322_s1, 1664, %s29_s21, [#allocation6], %s269_s26, %s269_s26, %s270_s27  }
  0x16   :  { %263 = dma.done.wait [#allocation4], 128  }
  0x17   :  { %264 = vsyncadd [#allocation4], 4294967168 }
  0x18   :  { %265 = dma.done.wait [#allocation6], 1664  }
  0x19   :  { %266 = vsyncadd [#allocation6], 4294965632  ;;  %v271_v0 = vmov 0.0   ;;  %vm272_vm0 = vmmov 0   ;;  %vm72_vm1 = vcmask 1043456   ;;  %v59_v2 = vld [vmem:[#allocation5 + $0x58] sm:$0xff]  ;;  %v158_v22 = vstv %s325_s4 }
  0x1a   :  { %186 = vmatprep.subr.mxu0 %v271_v0  ;;  %212 = vmatprep.mubr.msk.f32.mxu0 %vm272_vm0, %v271_v0  ;;  %v60_v1 = vld [vmem:[#allocation5 + $0x60] sm:$0xf]  ;;  %v58_v3 = vld [vmem:[#allocation5 + $0x50] sm:$0xff]  ;;  %v57_v4 = vld [vmem:[#allocation5 + $0x48] sm:$0xff]  ;;  %vm68_vm2 = vcmask 818176   ;;  %vm160_vm3 = vcmask 7168  }
  0x1b   :  { %187 = vmatpush3.msk.msra.mxu0 %vm72_vm1, %v60_v1  ;;  %v56_v5 = vld [vmem:[#allocation5 + $0x40] sm:$0xff]  ;;  %v55_v6 = vld [vmem:[#allocation5 + $0x38] sm:$0xff]  ;;  %v54_v7 = vld [vmem:[#allocation5 + $0x30] sm:$0xff] }
  0x1c   :  { %188 = vmatprep.subr.mxu0 %v271_v0  ;;  %v53_v8 = vld [vmem:[#allocation5 + $0x28] sm:$0xff]  ;;  %v52_v9 = vld [vmem:[#allocation5 + $0x20] sm:$0xff]  ;;  %v51_v10 = vld [vmem:[#allocation5 + $0x18] sm:$0xff] }
  0x1d   :  { %189 = vmatpush3.msra.mxu0 %v59_v2  ;;  %v50_v11 = vld [vmem:[#allocation5 + $0x10] sm:$0xff]  ;;  %v49_v12 = vld [vmem:[#allocation5 + $0x8] sm:$0xff]  ;;  %v48_v13 = vld [vmem:[#allocation5] sm:$0xff] }
  0x1e   :  { %190 = vmatprep.subr.mxu0 %v271_v0  ;;  %v47_v14 = vld [vmem:[#allocation3] sm:$0xff] }
  0x1f   :  { %191 = vmatpush3.msra.mxu0 %v58_v3  ;;  %v168_v15 = vld [vmem:[%s323_s2] ss:$0 sm:$0xff] }
  0x20   :  { %192 = vmatprep.subr.mxu0 %v271_v0  ;;  %v171_v19 = vld [vmem:[%s324_s3] ss:$0 sm:$0xff] }
  0x21   :  { %193 = vmatpush3.msra.mxu0 %v57_v4 }
  0x22   :  { %194 = vmatprep.subr.mxu0 %v271_v0 }
  0x23   :  { %195 = vmatpush3.msra.mxu0 %v56_v5 }
  0x24   :  { %196 = vmatprep.subr.mxu0 %v271_v0 }
  0x25   :  { %197 = vmatpush3.msra.mxu0 %v55_v6 }
  0x26   :  { %198 = vmatprep.subr.mxu0 %v271_v0 }
  0x27   :  { %199 = vmatpush3.msra.mxu0 %v54_v7 }
  0x28   :  { %200 = vmatprep.subr.mxu0 %v271_v0 }
  0x29   :  { %201 = vmatpush3.msra.mxu0 %v53_v8 }
  0x2a   :  { %202 = vmatprep.subr.mxu0 %v271_v0 }
  0x2b   :  { %203 = vmatpush3.msra.mxu0 %v52_v9 }
  0x2c   :  { %204 = vmatprep.subr.mxu0 %v271_v0 }
  0x2d   :  { %205 = vmatpush3.msra.mxu0 %v51_v10 }
  0x2e   :  { %206 = vmatprep.subr.mxu0 %v271_v0 }
  0x2f   :  { %207 = vmatpush3.msra.mxu0 %v50_v11 }
  0x30   :  { %208 = vmatprep.subr.mxu0 %v271_v0 }
  0x31   :  { %209 = vmatpush3.msra.mxu0 %v49_v12 }
  0x32   :  { %210 = vmatprep.subr.mxu0 %v271_v0 }
  0x33   :  { %211 = vmatpush3.msra.mxu0 %v48_v13 }
  0x34   :  { %213 = vmatmul.mubr.msk.f32.vlgmr.msra.gmra.mxu0 %vm68_vm2, %v47_v14 }
  0xf4   :  { %v142_v16 = vpop.f32.mrf.mxu0 }
  0xf5   :  { %v143_v17 = vadd.f32 %v168_v15, %v142_v16 }
  0xf6   :  { %v214_v18 = vpop.f32.mrf.mxu0 }
  0xf7   :  { %221 = vtanh.f32 %v143_v17 }
 0x104   :  { %v222_v20 = vpop.eup %221 }
 0x105   :  { %v154_v21 = vmul.f32 %v222_v20, %v171_v19 }
 0x107   :  { %155 = vadd.xlane.f32.xlu0 %v154_v21 }
 0x190   :  { %v156_v23 = vpop.xlane.xlu0 %155 }
 0x191   :  { %v159_v24 = vadd.f32 %v158_v22, %v156_v23 }
 0x193   :  { %161 = vst.msk [vmem:[%s326_s5] sm:$0xff] %vm160_vm3, %v159_v24 }
 0x194   :  { %166 = vsyncpa [#allocation4], 1 }
 0x195   :  { %167 = vsyncpa [#allocation6], 1 }

</bundles_post_ra>
